<compile_context>
chip_gen: v6e
topology: v6e:2x2x1
jax: 0.10.0
libtpu: 0.0.40
codegen_flags: <defaults>
</compile_context>

<pallas_src>
import jax
import jax.numpy as jnp
from jax.experimental import pallas as pl
from jax.experimental.pallas import tpu as pltpu


def _round_up(v, m):
    return ((v + m - 1) // m) * m


# ----------------------------- Pallas kernel --------------------------------

def _make_lvc_fused_kernel(n_nodes_p, n_graphs_p, layers_mp, hops):
    """Fused: (layers_mp-1) full LVC layers + pool-folded last layer + head."""

    def kernel(eps_ref, x_ref, a_ref, pa_ref, w_ref, wh_ref, bh_ref, o_ref):
        x_bf = x_ref[...]                        # (Np, Dp) bf16 node features
        x_f32 = x_bf.astype(jnp.float32)         # residual path stays f32 (VPU)

        # Layers 0 .. L-2 operate on all Np node rows.
        for l in range(layers_mp - 1):           # static unroll
            # One MXU pass aggregates all hops: (hops*Np, Np) @ (Np, Dp).
            h_all = jnp.dot(a_ref[...], x_bf, preferred_element_type=jnp.float32)
            out = (1.0 + eps_ref[l]) * x_f32     # eps scalar read from SMEM
            for hop in range(hops):              # static unroll, aligned slices
                h_bf = h_all[hop * n_nodes_p:(hop + 1) * n_nodes_p, :].astype(jnp.bfloat16)
                # per-hop MLP (single Linear, no bias, no activation)
                out = out + jnp.dot(h_bf, w_ref[l * hops + hop],
                                    preferred_element_type=jnp.float32)
            # TODO(synk): dropout(p=cfg.ldropout / cfg.dropout) skipped — eval mode.
            x_f32 = out
            x_bf = out.astype(jnp.bfloat16)

        # Last layer fused with per-graph mean pooling.  pa_ref stacks
        # [P@A_0; ...; P@A_{H-1}; P], so a single dot yields every pooled hop
        # aggregate plus the pooled residual, all on Gp rows instead of Np rows.
        l = layers_mp - 1
        pall = jnp.dot(pa_ref[...], x_bf, preferred_element_type=jnp.float32)
        pooled = (1.0 + eps_ref[l]) * pall[hops * n_graphs_p:(hops + 1) * n_graphs_p, :]
        for hop in range(hops):
            ph_bf = pall[hop * n_graphs_p:(hop + 1) * n_graphs_p, :].astype(jnp.bfloat16)
            pooled = pooled + jnp.dot(ph_bf, w_ref[l * hops + hop],
                                      preferred_element_type=jnp.float32)

        # Graph head: Linear(dim_inner, dim_target) on the pooled rows.
        o_ref[...] = jnp.dot(pooled.astype(jnp.bfloat16), wh_ref[...],
                             preferred_element_type=jnp.float32) + bh_ref[...]

    return kernel


# --------------------- one-time preparation (init time) ----------------------

def lvc_prepare_params(W_stack, eps, W_head, b_head, n_graphs):
    """Pad / stack / cast parameters ONCE at init time (not per forward)."""
    L, H, D, _ = W_stack.shape
    T = W_head.shape[1]
    Dp = _round_up(D, 128)
    Tp = _round_up(T, 128)
    Gp = _round_up(n_graphs, 8)

    Wp = jnp.pad(W_stack, ((0, 0), (0, 0), (0, Dp - D), (0, Dp - D)))
    Wp = Wp.reshape(L * H, Dp, Dp).astype(jnp.bfloat16)
    Whp = jnp.pad(W_head, ((0, Dp - D), (0, Tp - T))).astype(jnp.bfloat16)
    bhp = jnp.broadcast_to(jnp.pad(b_head, ((0, 0), (0, Tp - T))),
                           (Gp, Tp)).astype(jnp.float32)
    return eps.astype(jnp.float32), Wp, Whp, bhp


def lvc_prepare_graph(scatter_idx, node_idx, P):
    """One-time per-batch graph prep: dense aggregation matrices (identity
    folded in), pooled aggregation matrices for the pool-folded last layer."""
    hops = scatter_idx.shape[0]
    n_graphs, n_nodes = P.shape
    Np = _round_up(n_nodes, 8)
    Gp = _round_up(n_graphs, 8)

    eye = jnp.eye(n_nodes, dtype=jnp.float32)

    def build_A(hop):
        M = jnp.zeros((n_nodes, n_nodes), jnp.float32).at[
            node_idx[hop], scatter_idx[hop]].add(1.0)
        return eye + M                                      # A_hop = I + M_hop

    A = jnp.stack([build_A(h) for h in range(hops)])        # (hops, N, N)
    Ap = jnp.pad(A, ((0, 0), (0, Np - n_nodes), (0, Np - n_nodes)))
    Pp = jnp.pad(P, ((0, Gp - n_graphs), (0, Np - n_nodes)))
    PA = jnp.einsum('gn,hnm->hgm', Pp, Ap,
                    precision=jax.lax.Precision.HIGHEST)    # (hops, Gp, Np)

    # Aggregation (layers 0..L-2) and pooled aggregation + pool matrix (last
    # layer); integer / k-over-n_g entries are exact in bf16.
    A_cat = Ap.reshape(hops * Np, Np).astype(jnp.bfloat16)
    PA_cat = jnp.concatenate([PA.reshape(hops * Gp, Np), Pp],
                             axis=0).astype(jnp.bfloat16)   # ((hops+1)*Gp, Np)
    return A_cat, PA_cat


# ------------------------------ forward wrapper -------------------------------

def lvc_forward(x, eps, A_cat, PA_cat, W, W_head, b_head):
    """LVC forward on pre-prepared operands.

    x:       (N, D)                 f32 node features (only per-call input)
    eps:     (L,)                   f32 residual scales (SMEM scalars)
    A_cat:   (hops*Np, Np)          bf16 stacked (I + M_hop)
    PA_cat:  ((hops+1)*Gp, Np)      bf16 stacked [P@A_hop ...; P]
    W:       (L*hops, Dp, Dp)       bf16 per-layer/per-hop Linear weights
    W_head:  (Dp, Tp) bf16;  b_head: (Gp, Tp) f32
    Returns padded (Gp, Tp) f32 output; slice [:G, :T] outside.
    """
    N, D = x.shape
    Np = A_cat.shape[1]
    hops = A_cat.shape[0] // Np
    Gp = b_head.shape[0]
    L = eps.shape[0]
    Dp = W.shape[1]
    Tp = W_head.shape[1]

    # Only per-call prep: zero-pad x to lane/sublane-dense shape and cast to
    # bf16 (padded rows/cols stay zero so the math is exact).
    xp = jnp.pad(x, ((0, Np - N), (0, Dp - D))).astype(jnp.bfloat16)

    # TODO(synk): for large N, A_cat (O(hops*N^2)) no longer fits whole-array in
    # VMEM — add a row-tiled grid (BlockSpec index_maps, 'parallel' semantics
    # for v7x's two TCs, layer-indexed weight pipeline). At these sizes the
    # kernel is launch-bound, so the single fused grid-less call is fastest.
    return pl.pallas_call(
        _make_lvc_fused_kernel(Np, Gp, L, hops),
        out_shape=jax.ShapeDtypeStruct((Gp, Tp), jnp.float32),
        in_specs=[
            pl.BlockSpec(memory_space=pltpu.MemorySpace.SMEM),  # eps scalars
            pl.BlockSpec(memory_space=pltpu.MemorySpace.VMEM),  # x
            pl.BlockSpec(memory_space=pltpu.MemorySpace.VMEM),  # A_cat
            pl.BlockSpec(memory_space=pltpu.MemorySpace.VMEM),  # PA_cat
            pl.BlockSpec(memory_space=pltpu.MemorySpace.VMEM),  # W
            pl.BlockSpec(memory_space=pltpu.MemorySpace.VMEM),  # W_head
            pl.BlockSpec(memory_space=pltpu.MemorySpace.VMEM),  # b_head
        ],
        out_specs=pl.BlockSpec(memory_space=pltpu.MemorySpace.VMEM),
        compiler_params=pltpu.CompilerParams(vmem_limit_bytes=32 * 1024 * 1024),
    )(eps, xp, A_cat, PA_cat, W, W_head, b_head)


# --------------------------- references (plain JAX) ---------------------------

def lvc_reference_f32(x, scatter_idx, node_idx, W_stack, eps, P, W_head, b_head):
    """Faithful f32 mirror of the torch module (scatter-based aggregation)."""
    layers_mp, hops = W_stack.shape[0], W_stack.shape[1]
    for l in range(layers_mp):
        out = (1.0 + eps[l]) * x
        for hop in range(hops):
            h_v = x[scatter_idx[hop]]
            h = x.at[node_idx[hop]].add(h_v)      # scatter_reduce sum, include_self
            out = out + h @ W_stack[l, hop]       # hop_pool == 'sum'
        x = out
    pooled = P @ x                                 # global mean pool
    return pooled @ W_head + b_head[0]


def lvc_reference_bf16(x, scatter_idx, node_idx, W_stack, eps, P, W_head, b_head):
    """Mirror of the kernel numerics: bf16 dot operands, f32 accumulation,
    pooling folded into the last layer."""
    def mm(a, b):
        return jnp.dot(a.astype(jnp.bfloat16), b.astype(jnp.bfloat16),
                       preferred_element_type=jnp.float32)

    layers_mp, hops = W_stack.shape[0], W_stack.shape[1]
    n = x.shape[0]
    eye = jnp.eye(n, dtype=jnp.float32)
    A = [eye + jnp.zeros((n, n), jnp.float32).at[node_idx[h],
                                                 scatter_idx[h]].add(1.0)
         for h in range(hops)]

    x = x.astype(jnp.bfloat16).astype(jnp.float32)
    for l in range(layers_mp - 1):
        out = (1.0 + eps[l]) * x
        for hop in range(hops):
            out = out + mm(mm(A[hop], x), W_stack[l, hop])
        x = out
    l = layers_mp - 1
    pooled = (1.0 + eps[l]) * mm(P, x)
    for hop in range(hops):
        pooled = pooled + mm(mm(P @ A[hop], x), W_stack[l, hop])
    return mm(pooled, W_head) + b_head


# --------------------------------- main ---------------------------------------

if __name__ == "__main__":
    key = jax.random.PRNGKey(0)

    # sizes
    N = 16           # total nodes
    G = 2            # graphs in batch
    D = 32           # dim_features == dim_inner
    T = 3            # dim_target
    HOPS = 3         # max_path_length
    LAYERS_MP = 2
    E = 48           # walk entries per hop

    keys = jax.random.split(key, 8)
    x = jax.random.normal(keys[0], (N, D), dtype=jnp.float32)
    scatter_idx = jax.random.randint(keys[1], (HOPS, E), 0, N)   # agg_scatter_index_hop
    node_idx = jax.random.randint(keys[2], (HOPS, E), 0, N)      # agg_node_index_hop
    batch_idx = jnp.repeat(jnp.arange(G), N // G)                # node -> graph id

    # deterministic parameters
    eps = jnp.full((LAYERS_MP,), 0.1, dtype=jnp.float32)         # torch.ones(1)*0.1
    W_stack = (jax.random.normal(keys[3], (LAYERS_MP, HOPS, D, D),
                                 dtype=jnp.float32) / jnp.sqrt(D))
    W_head = jax.random.normal(keys[4], (D, T), dtype=jnp.float32) / jnp.sqrt(D)
    b_head = jax.random.normal(keys[5], (1, T), dtype=jnp.float32) * 0.01

    # per-graph mean-pool matrix
    onehot = (batch_idx[None, :] == jnp.arange(G)[:, None]).astype(jnp.float32)
    P = onehot / jnp.sum(onehot, axis=1, keepdims=True)          # (G, N)

    # One-time preparation (parameter-init / data-loading time, NOT per forward).
    eps_p, W_p, Wh_p, bh_p = lvc_prepare_params(W_stack, eps, W_head, b_head, G)
    A_cat, PA_cat = lvc_prepare_graph(scatter_idx, node_idx, P)

    fwd = jax.jit(lvc_forward)
    out_padded = jax.block_until_ready(
        fwd(x, eps_p, A_cat, PA_cat, W_p, Wh_p, bh_p))
    out = out_padded[:G, :T]

    ref_bf16 = lvc_reference_bf16(x, scatter_idx, node_idx, W_stack, eps,
                                  P, W_head, b_head)
    ref_f32 = lvc_reference_f32(x, scatter_idx, node_idx, W_stack, eps,
                                P, W_head, b_head)

    assert out.shape == (G, T)
    # Tight check against an XLA mirror using identical bf16/f32 mixed precision.
    assert jnp.allclose(out, ref_bf16, atol=5e-3, rtol=5e-3), (out, ref_bf16)
    # Loose sanity check against the exact-f32 module semantics (bf16 MXU error).
    assert jnp.allclose(out, ref_f32, atol=5e-2, rtol=5e-2), (out, ref_f32)

    print("KERNEL_OK")
</pallas_src>

<mosaic_0001>
module attributes {stable_mosaic.version = 11 : i64} {
  func.func @kernel(%arg0: memref<2xf32, #tpu.memory_space<smem>>, %arg1: memref<16x128xbf16, #tpu.memory_space<vmem>>, %arg2: memref<48x16xbf16, #tpu.memory_space<vmem>>, %arg3: memref<32x16xbf16, #tpu.memory_space<vmem>>, %arg4: memref<6x128x128xbf16, #tpu.memory_space<vmem>>, %arg5: memref<128x128xbf16, #tpu.memory_space<vmem>>, %arg6: memref<8x128xf32, #tpu.memory_space<vmem>>, %arg7: memref<8x128xf32, #tpu.memory_space<vmem>>) attributes {dimension_semantics = [], scalar_prefetch = 0 : i64, scratch_operands = 0 : i64, tpu.core_type = #tpu.core_type<tc>} {
    %c0 = arith.constant 0 : index
    %c0_0 = arith.constant 0 : index
    %0 = vector.load %arg1[%c0, %c0_0] : memref<16x128xbf16, #tpu.memory_space<vmem>>, vector<16x128xbf16>
    %1 = arith.extf %0 : vector<16x128xbf16> to vector<16x128xf32>
    %c0_1 = arith.constant 0 : index
    %c0_2 = arith.constant 0 : index
    %2 = vector.load %arg2[%c0_1, %c0_2] : memref<48x16xbf16, #tpu.memory_space<vmem>>, vector<48x16xbf16>
    %cst = arith.constant dense<0.000000e+00> : vector<48x128xf32>
    %3 = tpu.matmul %2, %0, %cst {dimension_numbers = #tpu.dot_dimension_numbers<[1], [0], [0], [1], [0, 0, 1, 1], [], []>} : vector<48x16xbf16>, vector<16x128xbf16>, vector<48x128xf32> -> vector<48x128xf32>
    %c0_3 = arith.constant 0 : index
    %4 = memref.load %arg0[%c0_3] : memref<2xf32, #tpu.memory_space<smem>>
    %cst_4 = arith.constant 1.000000e+00 : f32
    %5 = arith.addf %cst_4, %4 : f32
    %6 = vector.broadcast %5 : f32 to vector<16x128xf32>
    %7 = arith.mulf %6, %1 : vector<16x128xf32>
    %8 = vector.extract_strided_slice %3 {offsets = [0, 0], sizes = [16, 128], strides = [1, 1]} : vector<48x128xf32> to vector<16x128xf32>
    %9 = arith.truncf %8 : vector<16x128xf32> to vector<16x128xbf16>
    %c0_5 = arith.constant 0 : index
    %c0_6 = arith.constant 0 : index
    %c0_7 = arith.constant 0 : index
    %10 = vector.load %arg4[%c0_5, %c0_6, %c0_7] : memref<6x128x128xbf16, #tpu.memory_space<vmem>>, vector<1x128x128xbf16>
    %11 = vector.shape_cast %10 : vector<1x128x128xbf16> to vector<128x128xbf16>
    %cst_8 = arith.constant dense<0.000000e+00> : vector<16x128xf32>
    %12 = tpu.matmul %9, %11, %cst_8 {dimension_numbers = #tpu.dot_dimension_numbers<[1], [0], [0], [1], [0, 0, 1, 1], [], []>} : vector<16x128xbf16>, vector<128x128xbf16>, vector<16x128xf32> -> vector<16x128xf32>
    %13 = arith.addf %7, %12 : vector<16x128xf32>
    %14 = vector.extract_strided_slice %3 {offsets = [16, 0], sizes = [16, 128], strides = [1, 1]} : vector<48x128xf32> to vector<16x128xf32>
    %15 = arith.truncf %14 : vector<16x128xf32> to vector<16x128xbf16>
    %c1 = arith.constant 1 : index
    %c0_9 = arith.constant 0 : index
    %c0_10 = arith.constant 0 : index
    %16 = vector.load %arg4[%c1, %c0_9, %c0_10] : memref<6x128x128xbf16, #tpu.memory_space<vmem>>, vector<1x128x128xbf16>
    %17 = vector.shape_cast %16 : vector<1x128x128xbf16> to vector<128x128xbf16>
    %cst_11 = arith.constant dense<0.000000e+00> : vector<16x128xf32>
    %18 = tpu.matmul %15, %17, %cst_11 {dimension_numbers = #tpu.dot_dimension_numbers<[1], [0], [0], [1], [0, 0, 1, 1], [], []>} : vector<16x128xbf16>, vector<128x128xbf16>, vector<16x128xf32> -> vector<16x128xf32>
    %19 = arith.addf %13, %18 : vector<16x128xf32>
    %20 = vector.extract_strided_slice %3 {offsets = [32, 0], sizes = [16, 128], strides = [1, 1]} : vector<48x128xf32> to vector<16x128xf32>
    %21 = arith.truncf %20 : vector<16x128xf32> to vector<16x128xbf16>
    %c2 = arith.constant 2 : index
    %c0_12 = arith.constant 0 : index
    %c0_13 = arith.constant 0 : index
    %22 = vector.load %arg4[%c2, %c0_12, %c0_13] : memref<6x128x128xbf16, #tpu.memory_space<vmem>>, vector<1x128x128xbf16>
    %23 = vector.shape_cast %22 : vector<1x128x128xbf16> to vector<128x128xbf16>
    %cst_14 = arith.constant dense<0.000000e+00> : vector<16x128xf32>
    %24 = tpu.matmul %21, %23, %cst_14 {dimension_numbers = #tpu.dot_dimension_numbers<[1], [0], [0], [1], [0, 0, 1, 1], [], []>} : vector<16x128xbf16>, vector<128x128xbf16>, vector<16x128xf32> -> vector<16x128xf32>
    %25 = arith.addf %19, %24 : vector<16x128xf32>
    %26 = arith.truncf %25 : vector<16x128xf32> to vector<16x128xbf16>
    %c0_15 = arith.constant 0 : index
    %c0_16 = arith.constant 0 : index
    %27 = vector.load %arg3[%c0_15, %c0_16] : memref<32x16xbf16, #tpu.memory_space<vmem>>, vector<32x16xbf16>
    %cst_17 = arith.constant dense<0.000000e+00> : vector<32x128xf32>
    %28 = tpu.matmul %27, %26, %cst_17 {dimension_numbers = #tpu.dot_dimension_numbers<[1], [0], [0], [1], [0, 0, 1, 1], [], []>} : vector<32x16xbf16>, vector<16x128xbf16>, vector<32x128xf32> -> vector<32x128xf32>
    %c1_18 = arith.constant 1 : index
    %29 = memref.load %arg0[%c1_18] : memref<2xf32, #tpu.memory_space<smem>>
    %cst_19 = arith.constant 1.000000e+00 : f32
    %30 = arith.addf %cst_19, %29 : f32
    %31 = vector.extract_strided_slice %28 {offsets = [24, 0], sizes = [8, 128], strides = [1, 1]} : vector<32x128xf32> to vector<8x128xf32>
    %32 = vector.broadcast %30 : f32 to vector<8x128xf32>
    %33 = arith.mulf %32, %31 : vector<8x128xf32>
    %34 = vector.extract_strided_slice %28 {offsets = [0, 0], sizes = [8, 128], strides = [1, 1]} : vector<32x128xf32> to vector<8x128xf32>
    %35 = arith.truncf %34 : vector<8x128xf32> to vector<8x128xbf16>
    %c3 = arith.constant 3 : index
    %c0_20 = arith.constant 0 : index
    %c0_21 = arith.constant 0 : index
    %36 = vector.load %arg4[%c3, %c0_20, %c0_21] : memref<6x128x128xbf16, #tpu.memory_space<vmem>>, vector<1x128x128xbf16>
    %37 = vector.shape_cast %36 : vector<1x128x128xbf16> to vector<128x128xbf16>
    %cst_22 = arith.constant dense<0.000000e+00> : vector<8x128xf32>
    %38 = tpu.matmul %35, %37, %cst_22 {dimension_numbers = #tpu.dot_dimension_numbers<[1], [0], [0], [1], [0, 0, 1, 1], [], []>} : vector<8x128xbf16>, vector<128x128xbf16>, vector<8x128xf32> -> vector<8x128xf32>
    %39 = arith.addf %33, %38 : vector<8x128xf32>
    %40 = vector.extract_strided_slice %28 {offsets = [8, 0], sizes = [8, 128], strides = [1, 1]} : vector<32x128xf32> to vector<8x128xf32>
    %41 = arith.truncf %40 : vector<8x128xf32> to vector<8x128xbf16>
    %c4 = arith.constant 4 : index
    %c0_23 = arith.constant 0 : index
    %c0_24 = arith.constant 0 : index
    %42 = vector.load %arg4[%c4, %c0_23, %c0_24] : memref<6x128x128xbf16, #tpu.memory_space<vmem>>, vector<1x128x128xbf16>
    %43 = vector.shape_cast %42 : vector<1x128x128xbf16> to vector<128x128xbf16>
    %cst_25 = arith.constant dense<0.000000e+00> : vector<8x128xf32>
    %44 = tpu.matmul %41, %43, %cst_25 {dimension_numbers = #tpu.dot_dimension_numbers<[1], [0], [0], [1], [0, 0, 1, 1], [], []>} : vector<8x128xbf16>, vector<128x128xbf16>, vector<8x128xf32> -> vector<8x128xf32>
    %45 = arith.addf %39, %44 : vector<8x128xf32>
    %46 = vector.extract_strided_slice %28 {offsets = [16, 0], sizes = [8, 128], strides = [1, 1]} : vector<32x128xf32> to vector<8x128xf32>
    %47 = arith.truncf %46 : vector<8x128xf32> to vector<8x128xbf16>
    %c5 = arith.constant 5 : index
    %c0_26 = arith.constant 0 : index
    %c0_27 = arith.constant 0 : index
    %48 = vector.load %arg4[%c5, %c0_26, %c0_27] : memref<6x128x128xbf16, #tpu.memory_space<vmem>>, vector<1x128x128xbf16>
    %49 = vector.shape_cast %48 : vector<1x128x128xbf16> to vector<128x128xbf16>
    %cst_28 = arith.constant dense<0.000000e+00> : vector<8x128xf32>
    %50 = tpu.matmul %47, %49, %cst_28 {dimension_numbers = #tpu.dot_dimension_numbers<[1], [0], [0], [1], [0, 0, 1, 1], [], []>} : vector<8x128xbf16>, vector<128x128xbf16>, vector<8x128xf32> -> vector<8x128xf32>
    %51 = arith.addf %45, %50 : vector<8x128xf32>
    %52 = arith.truncf %51 : vector<8x128xf32> to vector<8x128xbf16>
    %c0_29 = arith.constant 0 : index
    %c0_30 = arith.constant 0 : index
    %53 = vector.load %arg5[%c0_29, %c0_30] : memref<128x128xbf16, #tpu.memory_space<vmem>>, vector<128x128xbf16>
    %cst_31 = arith.constant dense<0.000000e+00> : vector<8x128xf32>
    %54 = tpu.matmul %52, %53, %cst_31 {dimension_numbers = #tpu.dot_dimension_numbers<[1], [0], [0], [1], [0, 0, 1, 1], [], []>} : vector<8x128xbf16>, vector<128x128xbf16>, vector<8x128xf32> -> vector<8x128xf32>
    %c0_32 = arith.constant 0 : index
    %c0_33 = arith.constant 0 : index
    %55 = vector.load %arg6[%c0_32, %c0_33] : memref<8x128xf32, #tpu.memory_space<vmem>>, vector<8x128xf32>
    %56 = arith.addf %54, %55 : vector<8x128xf32>
    %c0_34 = arith.constant 0 : index
    %c0_35 = arith.constant 0 : index
    %57 = vector.load %arg7[%c0_34, %c0_35] : memref<8x128xf32, #tpu.memory_space<vmem>>, vector<8x128xf32>
    tpu.vector_store %arg7[%c0_34, %c0_35], %56 {strides = array<i32>} : memref<8x128xf32, #tpu.memory_space<vmem>>, vector<8x128xf32>,
    return
  }
}

</mosaic_0001>

<bundles_post_ra>
// kernel: lvc_forward.1
= control target key start
LH: loop header
LB: loop body
LE: loop exit
PB: predicated region body
PF: predicated region fallthrough
CT: control target
= control target key end

     0   :  { %12 = vsyncpa [#allocation5], 0  ;;  %s1619_s0 = inlined_call_operand.vmem [shape: f32[2], index: 0, kind: input, shape index: {}]   ;;  %s1620_s1 = inlined_call_operand.vmem [shape: bf16[16,128], index: 1, kind: input, shape index: {}]   ;;  %s1621_s2 = inlined_call_operand.vmem [shape: bf16[48,16], index: 2, kind: input, shape index: {}]   ;;  %s1622_s3 = inlined_call_operand.vmem [shape: bf16[32,16], index: 3, kind: input, shape index: {}]   ;;  %s1623_s4 = inlined_call_operand.hbm [shape: bf16[6,128,128], index: 4, kind: input, shape index: {}]   ;;  %s1624_s5 = inlined_call_operand.vmem [shape: bf16[128,128], index: 5, kind: input, shape index: {}]   ;;  %s1625_s6 = inlined_call_operand.vmem [shape: f32[8,128], index: 6, kind: input, shape index: {}]   ;;  %s1626_s7 = inlined_call_operand.hbm [shape: f32[8,128], index: 7, kind: output, shape index: {}]  }
   0x1   :  { %13 = vsyncpa [#allocation3], 0 }
   0x2   :  { %14 = vsyncpa [#allocation4], 0  ;;  %s21_s26 = sshll.u32 %s1619_s0, 4  ;;  %s22_s26 = int_to_ptr.vmem [resolvable:$true] %s21_s26 }
   0x3   :  { %s1370_s27 = scalar_lea.vmem %s22_s26, 16  ;;  %p1375_p1 = scmp.lt.s32.totalorder %s22_s26, %s22_s26 }
   0x4   :  { %p1371_p0 = scmp.ne.s32.totalorder %s22_s26, %s1370_s27  ;;  %p1376_p2 = scmp.lt.s32.totalorder %s1370_s27, %s1370_s27 }
   0x6   :  { %p1377_p3 = por %p1376_p2, %p1375_p1 }
   0x8   :  { %p1378_p4 = pnand %p1377_p3, %p1371_p0 }
   0xa   :  { %1381 = shalt.err (!%p1378_p4)
}
   0xb   :  { %s1428_s28 = smov [#allocation2]   ;;  %s1429_s29 = smov [#allocation6]  }
   0xc   :  { %24 = dma.vmem_to_smem %s22_s26, 16, %s1428_s28, [#allocation5]  }
   0xd   :  { %s36_s30 = sshll.u32 %s1429_s29, 4  ;;  %s37_s30 = int_to_ptr.vmem [resolvable:$true] %s36_s30 }
   0xe   :  { %s1390_s8 = scalar_lea.vmem %s37_s30, 6144  ;;  %p1395_p6 = scmp.lt.s32.totalorder %s37_s30, %s37_s30 }
   0xf   :  { %p1391_p5 = scmp.ne.s32.totalorder %s37_s30, %s1390_s8  ;;  %p1396_p7 = scmp.lt.s32.totalorder %s1390_s8, %s1390_s8 }
  0x11   :  { %p1397_p8 = por %p1396_p7, %p1395_p6 }
  0x13   :  { %p1398_p9 = pnand %p1397_p8, %p1391_p5 }
  0x15   :  { %1401 = shalt.err (!%p1398_p9)
}
  0x16   :  { %s1430_s0 = smov 64   ;;  %s1431_s9 = smov 4  }
  0x17   :  { %42 = dma.hbm_to_vmem [thread:$0]  %s1623_s4, 6144, %s37_s30, [#allocation3], %s1430_s0, %s1430_s0, %s1431_s9  }
  0x18   :  { %1422 = dma.done.wait [#allocation5], 16  }
  0x19   :  { %1423 = vsyncadd [#allocation5], 4294967280 }
  0x1a   :  { %1424 = dma.done.wait [#allocation3], 6144  }
  0x1b   :  { %1425 = vsyncadd [#allocation3], 4294961152 }
  0x1c   :  { %53 = sfence }
  0x1d   :  { %v1484_v0 = vld [vmem:[%s1620_s1] sm:$0xff]   ;;  %v1432_v1 = vmov 0.0   ;;  %vm1433_vm0 = vmmov 0   ;;  %vm86_vm1 = vcmask 130048   ;;  %v1311_v3 = vld [vmem:[#allocation6 + $0x38] sm:$0xff]   ;;  %v1312_v4 = vld [vmem:[#allocation6 + $0x30] sm:$0xff]  }
  0x1e   :  { %1140 = vmatprep.subr.bf16.mxu0 %v1432_v1  ;;  %1142 = vmatprep.mubr.msk.bf16.mxu0 %vm1433_vm0, %v1432_v1  ;;  %v1308_v2 = vld [vmem:[%s1621_s2] sm:$0xff]   ;;  %v1314_v5 = vld [vmem:[#allocation6 + $0x78] sm:$0xff]   ;;  %v1309_v6 = vld [vmem:[%s1621_s2 + $0x8] sm:$0xff]   ;;  %s153_s19 = sld [smem:[#allocation2]]  ;;  %v57_v59 = vunpack.c.l.bf16 %v1484_v0  ;;  %v58_v60 = vunpack.c.h.bf16 %v1484_v0  ;;  %s1434_s4 = smov [#allocation7]  }
  0x1f   :  { %1154 = vmatprep.subr.bf16.mxu1 %v1432_v1  ;;  %1170 = vmatprep.mubr.msk.bf16.mxu1 %vm1433_vm0, %v1432_v1  ;;  %v1316_v7 = vld [vmem:[#allocation6 + $0x70] sm:$0xff]   ;;  %v1313_v8 = vld [vmem:[#allocation6 + $0x28] sm:$0xff]   ;;  %v1315_v10 = vld [vmem:[#allocation6 + $0x20] sm:$0xff]   ;;  %s1037_s14 = sld [smem:[#allocation2 + $0x1]]  ;;  %s992_s16 = sshll.u32 %s1434_s4, 4  ;;  %s993_s16 = int_to_ptr.vmem [resolvable:$true] %s992_s16 }
  0x20   :  { %1141 = vmatpush3.bf16.msra.mxu0 %v1484_v0  ;;  %1155 = vmatpush3.bf16.msra.mxu1 %v1311_v3  ;;  %v1318_v9 = vld [vmem:[#allocation6 + $0x68] sm:$0xff]   ;;  %v1320_v11 = vld [vmem:[#allocation6 + $0x60] sm:$0xff]   ;;  %v1310_v12 = vld [vmem:[%s1621_s2 + $0x10] sm:$0xff]   ;;  %s1402_s17 = scalar_lea.vmem %s993_s16, 128  ;;  %p1407_p11 = scmp.lt.s32.totalorder %s993_s16, %s993_s16 }
  0x21   :  { %1174 = vmatprep.subr.bf16.mxu0 %v1432_v1  ;;  %1156 = vmatprep.subr.bf16.mxu1 %v1432_v1  ;;  %v1317_v13 = vld [vmem:[#allocation6 + $0x18] sm:$0xff]   ;;  %v1319_v14 = vld [vmem:[#allocation6 + $0x10] sm:$0xff]   ;;  %v1321_v15 = vld [vmem:[#allocation6 + $0x8] sm:$0xff]   ;;  %p1403_p10 = scmp.ne.s32.totalorder %s993_s16, %s1402_s17  ;;  %p1408_p12 = scmp.lt.s32.totalorder %s1402_s17, %s1402_s17 }
  0x22   :  { %v1322_v16 = vld [vmem:[#allocation6 + $0x58] sm:$0xff]   ;;  %v1323_v17 = vld [vmem:[#allocation6] sm:$0xff]   ;;  %v1324_v18 = vld [vmem:[#allocation6 + $0x50] sm:$0xff]  }
  0x23   :  { %1143 = vmatmul.mubr.msk.bf16.vlgmr.msra.gmra.mxu0 %vm86_vm1, %v1308_v2  ;;  %v1326_v19 = vld [vmem:[#allocation6 + $0x48] sm:$0xff]   ;;  %v1328_v20 = vld [vmem:[#allocation6 + $0x40] sm:$0xff]   ;;  %v1325_v24 = vld [vmem:[#allocation6 + $0xb8] sm:$0xff]   ;;  %p1409_p13 = por %p1408_p12, %p1407_p11 }
  0x24   :  { %1146 = vmatprep.mubr.msk.bf16.mxu0 %vm1433_vm0, %v1432_v1  ;;  %1175 = vmatpush3.bf16.msra.mxu0 %v1314_v5  ;;  %v1327_v28 = vld [vmem:[#allocation6 + $0xb0] sm:$0xff]   ;;  %v1329_v31 = vld [vmem:[#allocation6 + $0xa8] sm:$0xff]   ;;  %v1330_v34 = vld [vmem:[#allocation6 + $0xa0] sm:$0xff]   ;;  %s154_s20 = sadd.f32 1.0, %s153_s19 }
  0x25   :  { %1157 = vmatpush3.bf16.msra.mxu1 %v1312_v4  ;;  %1176 = vmatprep.subr.bf16.mxu0 %v1432_v1  ;;  %v1331_v37 = vld [vmem:[#allocation6 + $0x98] sm:$0xff]   ;;  %v1332_v40 = vld [vmem:[#allocation6 + $0x90] sm:$0xff]   ;;  %v1333_v41 = vld [vmem:[#allocation6 + $0x88] sm:$0xff]   ;;  %s555_s15 = sadd.f32 1.0, %s1037_s14  ;;  %p1410_p0 = pnand %p1409_p13, %p1403_p10 }
  0x26   :  { %1158 = vmatprep.subr.bf16.mxu1 %v1432_v1  ;;  %v1334_v42 = vld [vmem:[#allocation6 + $0x80] sm:$0xff]   ;;  %v1339_v45 = vld [vmem:[#allocation6 + $0x138] sm:$0xff]   ;;  %v1341_v46 = vld [vmem:[#allocation6 + $0x130] sm:$0xff]   ;;  %v155_v61 = vstv %s154_s20 }
  0x27   :  { %v1335_v44 = vld [vmem:[%s1622_s3] sm:$0xff]   ;;  %v1343_v47 = vld [vmem:[#allocation6 + $0x128] sm:$0xff]   ;;  %v1347_v49 = vld [vmem:[#allocation6 + $0x118] sm:$0xff]   ;;  %v156_v62 = vmul.f32 %v155_v61, %v57_v59  ;;  %v157_v63 = vmul.f32 %v155_v61, %v58_v60 }
  0x28   :  { %1177 = vmatpush3.bf16.msra.mxu0 %v1316_v7  ;;  %v1345_v48 = vld [vmem:[#allocation6 + $0x120] sm:$0xff]   ;;  %v1349_v50 = vld [vmem:[#allocation6 + $0x110] sm:$0xff]   ;;  %v1337_v0 = vld [vmem:[#allocation6 + $0xf8] sm:$0xff]  }
  0x29   :  { %1159 = vmatpush3.bf16.msra.mxu1 %v1313_v8  ;;  %1178 = vmatprep.subr.bf16.mxu0 %v1432_v1 }
  0x2a   :  { %1160 = vmatprep.subr.bf16.mxu1 %v1432_v1 }
  0x2b   :  { %1147 = vmatmul.mubr.msk.bf16.gmra.mxu0 %vm86_vm1, %v1309_v6 }
  0x2c   :  { %1150 = vmatprep.mubr.msk.bf16.mxu0 %vm1433_vm0, %v1432_v1  ;;  %1179 = vmatpush3.bf16.msra.mxu0 %v1318_v9 }
  0x2d   :  { %1161 = vmatpush3.bf16.msra.mxu1 %v1315_v10  ;;  %1180 = vmatprep.subr.bf16.mxu0 %v1432_v1 }
  0x2e   :  { %1162 = vmatprep.subr.bf16.mxu1 %v1432_v1 }
  0x30   :  { %1181 = vmatpush3.bf16.msra.mxu0 %v1320_v11 }
  0x31   :  { %1163 = vmatpush3.bf16.msra.mxu1 %v1317_v13  ;;  %1182 = vmatprep.subr.bf16.mxu0 %v1432_v1  ;;  %v1336_v13 = vld [vmem:[%s1622_s3 + $0x8] sm:$0xff]  }
  0x32   :  { %1164 = vmatprep.subr.bf16.mxu1 %v1432_v1 }
  0x33   :  { %1151 = vmatmul.mubr.msk.bf16.gmra.mxu0 %vm86_vm1, %v1310_v12 }
  0x34   :  { %1190 = vmatprep.mubr.msk.bf16.mxu0 %vm1433_vm0, %v1432_v1  ;;  %1183 = vmatpush3.bf16.msra.mxu0 %v1322_v16  ;;  %v1342_v16 = vld [vmem:[#allocation6 + $0xe0] sm:$0xff]  }
  0x35   :  { %1165 = vmatpush3.bf16.msra.mxu1 %v1319_v14  ;;  %1184 = vmatprep.subr.bf16.mxu0 %v1432_v1  ;;  %v1338_v14 = vld [vmem:[#allocation6 + $0xf0] sm:$0xff]  }
  0x36   :  { %1166 = vmatprep.subr.bf16.mxu1 %v1432_v1 }
  0x38   :  { %1185 = vmatpush3.bf16.msra.mxu0 %v1324_v18  ;;  %v1346_v18 = vld [vmem:[#allocation6 + $0xd0] sm:$0xff]  }
  0x39   :  { %1167 = vmatpush3.bf16.msra.mxu1 %v1321_v15  ;;  %1186 = vmatprep.subr.bf16.mxu0 %v1432_v1  ;;  %v1340_v15 = vld [vmem:[#allocation6 + $0xe8] sm:$0xff]  }
  0x3a   :  { %1168 = vmatprep.subr.bf16.mxu1 %v1432_v1 }
  0x3c   :  { %1187 = vmatpush3.bf16.msra.mxu0 %v1326_v19  ;;  %v1348_v19 = vld [vmem:[#allocation6 + $0xc8] sm:$0xff]  }
  0x3d   :  { %1169 = vmatpush3.bf16.msra.mxu1 %v1323_v17  ;;  %1188 = vmatprep.subr.bf16.mxu0 %v1432_v1  ;;  %v1344_v17 = vld [vmem:[#allocation6 + $0xd8] sm:$0xff]  }
  0x3e   :  { %1194 = vmatprep.subr.bf16.mxu1 %v1432_v1 }
  0x40   :  { %1189 = vmatpush3.bf16.msra.mxu0 %v1328_v20  ;;  %v1350_v20 = vld [vmem:[#allocation6 + $0xc0] sm:$0xff]  }
  0xe3   :  { %v130_v21 = vpop.f32.mrf.mxu0 }
  0xe5   :  { %v1144_v22 = vpop.f32.mrf.mxu0 }
  0xe6   :  { %v1353_v22 = vld [vmem:[#allocation6 + $0x100] sm:$0xff]  }
  0xe7   :  { %v133_v23 = vpop.f32.mrf.mxu0 }
  0xe8   :  { %v158_v25 = vpack.c.bf16 %v133_v23, %v130_v21  ;;  %v1351_v21 = vld [vmem:[#allocation6 + $0x108] sm:$0xff]  }
  0xe9   :  { %v1145_v26 = vpop.f32.mrf.mxu0 }
  0xea   :  { %1171 = vmatmul.mubr.bf16.vlgmr.msra.gmra.mxu1 %v158_v25  ;;  %v1352_v25 = vld [vmem:[#allocation6 + $0x178] sm:$0xff]  }
  0xeb   :  { %1195 = vmatpush3.bf16.msra.mxu1 %v1325_v24  ;;  %v138_v27 = vpop.f32.mrf.mxu0  ;;  %1210 = vmatprep.mubr.msk.bf16.mxu1 %vm1433_vm0, %v1432_v1 }
  0xec   :  { %1196 = vmatprep.subr.bf16.mxu1 %v1432_v1 }
  0xed   :  { %v1148_v29 = vpop.f32.mrf.mxu0 }
  0xee   :  { %v1354_v29 = vld [vmem:[#allocation6 + $0x170] sm:$0xff]  }
  0xef   :  { %1197 = vmatpush3.bf16.msra.mxu1 %v1327_v28  ;;  %v141_v30 = vpop.f32.mrf.mxu0 }
  0xf0   :  { %v266_v32 = vpack.c.bf16 %v141_v30, %v138_v27  ;;  %1198 = vmatprep.subr.bf16.mxu1 %v1432_v1 }
  0xf1   :  { %v1149_v33 = vpop.f32.mrf.mxu0 }
  0xf2   :  { %1191 = vmatmul.mubr.bf16.vlgmr.msra.gmra.mxu0 %v266_v32  ;;  %v1356_v32 = vld [vmem:[#allocation6 + $0x160] sm:$0xff]   ;;  %v1357_v33 = vld [vmem:[#allocation6 + $0x158] sm:$0xff]  }
  0xf3   :  { %1199 = vmatpush3.bf16.msra.mxu1 %v1329_v31  ;;  %v146_v35 = vpop.f32.mrf.mxu0  ;;  %1216 = vmatprep.mubr.msk.bf16.mxu0 %vm86_vm1, %v1335_v44  ;;  %v1355_v31 = vld [vmem:[#allocation6 + $0x168] sm:$0xff]  }
  0xf4   :  { %1200 = vmatprep.subr.bf16.mxu1 %v1432_v1  ;;  %v1367_v44 = vld [vmem:[%s1624_s5 + $0x8] sm:$0xff]  }
  0xf5   :  { %v1152_v36 = vpop.f32.mrf.mxu0 }
  0xf6   :  { %v1360_v36 = vld [vmem:[#allocation6 + $0x140] sm:$0xff]  }
  0xf7   :  { %1201 = vmatpush3.bf16.msra.mxu1 %v1330_v34  ;;  %v149_v38 = vpop.f32.mrf.mxu0  ;;  %v1358_v34 = vld [vmem:[#allocation6 + $0x150] sm:$0xff]  }
  0xf8   :  { %1202 = vmatprep.subr.bf16.mxu1 %v1432_v1  ;;  %v375_v43 = vpack.c.bf16 %v149_v38, %v146_v35  ;;  %v1359_v35 = vld [vmem:[#allocation6 + $0x148] sm:$0xff]   ;;  %v1361_v38 = vld [vmem:[%s1624_s5 + $0x38] sm:$0xff]  }
  0xf9   :  { %v1153_v39 = vpop.f32.mrf.mxu0 }
  0xfa   :  { %v1362_v39 = vld [vmem:[%s1624_s5 + $0x30] sm:$0xff]  }
  0xfb   :  { %1203 = vmatpush3.bf16.msra.mxu1 %v1331_v37 }
  0xfc   :  { %1204 = vmatprep.subr.bf16.mxu1 %v1432_v1 }
  0xff   :  { %1205 = vmatpush3.bf16.msra.mxu1 %v1332_v40  ;;  %v1363_v40 = vld [vmem:[%s1624_s5 + $0x28] sm:$0xff]  }
 0x100   :  { %1206 = vmatprep.subr.bf16.mxu1 %v1432_v1 }
 0x103   :  { %1207 = vmatpush3.bf16.msra.mxu1 %v1333_v41  ;;  %v1364_v41 = vld [vmem:[%s1624_s5 + $0x20] sm:$0xff]  }
 0x104   :  { %1208 = vmatprep.subr.bf16.mxu1 %v1432_v1 }
 0x107   :  { %1209 = vmatpush3.bf16.msra.mxu1 %v1334_v42  ;;  %v1365_v42 = vld [vmem:[%s1624_s5 + $0x18] sm:$0xff]  }
 0x108   :  { %1240 = vmatprep.subr.bf16.mxu1 %v1432_v1 }
 0x10a   :  { %1211 = vmatmul.mubr.bf16.vlgmr.msra.gmra.mxu1 %v375_v43  ;;  %v1366_v43 = vld [vmem:[%s1624_s5 + $0x10] sm:$0xff]  }
 0x10b   :  { %1256 = vmatprep.mubr.msk.bf16.mxu1 %vm1433_vm0, %v1432_v1  ;;  %1241 = vmatpush3.bf16.msra.mxu1 %v1339_v45  ;;  %v1368_v45 = vld [vmem:[%s1624_s5] sm:$0xff]  }
 0x10c   :  { %1242 = vmatprep.subr.bf16.mxu1 %v1432_v1 }
 0x10f   :  { %1243 = vmatpush3.bf16.msra.mxu1 %v1341_v46 }
 0x110   :  { %1244 = vmatprep.subr.bf16.mxu1 %v1432_v1 }
 0x113   :  { %1245 = vmatpush3.bf16.msra.mxu1 %v1343_v47 }
 0x114   :  { %1246 = vmatprep.subr.bf16.mxu1 %v1432_v1 }
 0x117   :  { %1247 = vmatpush3.bf16.msra.mxu1 %v1345_v48 }
 0x118   :  { %1248 = vmatprep.subr.bf16.mxu1 %v1432_v1 }
 0x11b   :  { %1249 = vmatpush3.bf16.msra.mxu1 %v1347_v49 }
 0x11c   :  { %1250 = vmatprep.subr.bf16.mxu1 %v1432_v1 }
 0x11f   :  { %1251 = vmatpush3.bf16.msra.mxu1 %v1349_v50 }
 0x120   :  { %1252 = vmatprep.subr.bf16.mxu1 %v1432_v1 }
 0x123   :  { %1253 = vmatpush3.bf16.msra.mxu1 %v1351_v21 }
 0x124   :  { %1254 = vmatprep.subr.bf16.mxu1 %v1432_v1 }
 0x127   :  { %1255 = vmatpush3.bf16.msra.mxu1 %v1353_v22 }
 0x128   :  { %1280 = vmatprep.subr.bf16.mxu1 %v1432_v1 }
 0x1aa   :  { %v257_v51 = vpop.f32.mrf.mxu1 }
 0x1ab   :  { %v264_v3 = vadd.f32 %v257_v51, %v156_v62 }
 0x1ac   :  { %v1172_v52 = vpop.f32.mrf.mxu1 }
 0x1ae   :  { %v260_v53 = vpop.f32.mrf.mxu1 }
 0x1af   :  { %v265_v4 = vadd.f32 %v260_v53, %v157_v63  ;;  %v896_v63 = vld [vmem:[%s1625_s6] sm:$0xff] }
 0x1b0   :  { %v1173_v54 = vpop.f32.mrf.mxu1 }
 0x1b1   :  { %v556_v54 = vstv %s555_s15 }
 0x1b2   :  { %v366_v55 = vpop.f32.mrf.mxu0 }
 0x1b3   :  { %v373_v6 = vadd.f32 %v366_v55, %v264_v3 }
 0x1b4   :  { %v1192_v56 = vpop.f32.mrf.mxu0 }
 0x1b6   :  { %v369_v57 = vpop.f32.mrf.mxu0 }
 0x1b7   :  { %v374_v7 = vadd.f32 %v369_v57, %v265_v4 }
 0x1b8   :  { %v1193_v58 = vpop.f32.mrf.mxu0 }
 0x1ca   :  { %v475_v2 = vpop.f32.mrf.mxu1 }
 0x1cb   :  { %v482_v9 = vadd.f32 %v475_v2, %v373_v6 }
 0x1cc   :  { %v1212_v5 = vpop.f32.mrf.mxu1 }
 0x1ce   :  { %v478_v8 = vpop.f32.mrf.mxu1 }
 0x1cf   :  { %v483_v10 = vadd.f32 %v478_v8, %v374_v7 }
 0x1d0   :  { %v1213_v11 = vpop.f32.mrf.mxu1 }
 0x1d1   :  { %v484_v12 = vpack.c.bf16 %v483_v10, %v482_v9 }
 0x1d3   :  { %1214 = vmatprep.subr.bf16.mxu0 %v484_v12 }
 0x1d4   :  { %1215 = vmatpush3.bf16.msra.mxu0 %v484_v12 }
 0x1d5   :  { %1220 = vmatprep.subr.bf16.mxu0 %v1432_v1 }
 0x1d7   :  { %1217 = vmatmul.mubr.msk.bf16.vlgmr.msra.gmra.mxu0 %vm86_vm1, %v1336_v13 }
 0x1d8   :  { %1221 = vmatpush3.bf16.msra.mxu0 %v1337_v0  ;;  %1236 = vmatprep.mubr.msk.bf16.mxu0 %vm1433_vm0, %v1432_v1 }
 0x1d9   :  { %1222 = vmatprep.subr.bf16.mxu0 %v1432_v1 }
 0x1dc   :  { %1223 = vmatpush3.bf16.msra.mxu0 %v1338_v14 }
 0x1dd   :  { %1224 = vmatprep.subr.bf16.mxu0 %v1432_v1 }
 0x1e0   :  { %1225 = vmatpush3.bf16.msra.mxu0 %v1340_v15 }
 0x1e1   :  { %1226 = vmatprep.subr.bf16.mxu0 %v1432_v1 }
 0x1e4   :  { %1227 = vmatpush3.bf16.msra.mxu0 %v1342_v16 }
 0x1e5   :  { %1228 = vmatprep.subr.bf16.mxu0 %v1432_v1 }
 0x1e8   :  { %1229 = vmatpush3.bf16.msra.mxu0 %v1344_v17 }
 0x1e9   :  { %1230 = vmatprep.subr.bf16.mxu0 %v1432_v1 }
 0x1ec   :  { %1231 = vmatpush3.bf16.msra.mxu0 %v1346_v18 }
 0x1ed   :  { %1232 = vmatprep.subr.bf16.mxu0 %v1432_v1 }
 0x1f0   :  { %1233 = vmatpush3.bf16.msra.mxu0 %v1348_v19 }
 0x1f1   :  { %1234 = vmatprep.subr.bf16.mxu0 %v1432_v1 }
 0x1f4   :  { %1235 = vmatpush3.bf16.msra.mxu0 %v1350_v20 }
 0x1f5   :  { %1260 = vmatprep.subr.bf16.mxu0 %v1432_v1 }
 0x297   :  { %v1218_v23 = vpop.f32.mrf.mxu0 }
 0x298   :  { %v772_v37 = vpack.c.bf16 %v1218_v23, %v1218_v23 }
 0x299   :  { %v539_v24 = vpop.f32.mrf.mxu0 }
 0x29a   :  { %v558_v26 = vpack.c.bf16 %v539_v24, %v539_v24 }
 0x29b   :  { %v1568_v27 = vpop.f32.mrf.mxu0 }
 0x29c   :  { %1237 = vmatmul.mubr.bf16.vlgmr.msra.gmra.mxu0 %v558_v26  ;;  %v557_v55 = vmul.f32 %v1568_v27, %v556_v54 }
 0x29d   :  { %1261 = vmatpush3.bf16.msra.mxu0 %v1352_v25  ;;  %v542_v28 = vpop.f32.mrf.mxu0  ;;  %1276 = vmatprep.mubr.msk.bf16.mxu0 %vm1433_vm0, %v1432_v1 }
 0x29e   :  { %v665_v30 = vpack.c.bf16 %v542_v28, %v542_v28  ;;  %1262 = vmatprep.subr.bf16.mxu0 %v1432_v1 }
 0x2a0   :  { %1257 = vmatmul.mubr.bf16.vlgmr.msra.gmra.mxu1 %v665_v30 }
 0x2a1   :  { %1263 = vmatpush3.bf16.msra.mxu0 %v1354_v29  ;;  %1296 = vmatprep.mubr.msk.bf16.mxu1 %vm1433_vm0, %v1432_v1 }
 0x2a2   :  { %1264 = vmatprep.subr.bf16.mxu0 %v1432_v1  ;;  %1281 = vmatpush3.bf16.msra.mxu1 %v1361_v38 }
 0x2a3   :  { %1282 = vmatprep.subr.bf16.mxu1 %v1432_v1 }
 0x2a5   :  { %1265 = vmatpush3.bf16.msra.mxu0 %v1355_v31 }
 0x2a6   :  { %1266 = vmatprep.subr.bf16.mxu0 %v1432_v1  ;;  %1283 = vmatpush3.bf16.msra.mxu1 %v1362_v39 }
 0x2a7   :  { %1284 = vmatprep.subr.bf16.mxu1 %v1432_v1 }
 0x2a9   :  { %1267 = vmatpush3.bf16.msra.mxu0 %v1356_v32 }
 0x2aa   :  { %1268 = vmatprep.subr.bf16.mxu0 %v1432_v1  ;;  %1285 = vmatpush3.bf16.msra.mxu1 %v1363_v40 }
 0x2ab   :  { %1286 = vmatprep.subr.bf16.mxu1 %v1432_v1 }
 0x2ad   :  { %1269 = vmatpush3.bf16.msra.mxu0 %v1357_v33 }
 0x2ae   :  { %1270 = vmatprep.subr.bf16.mxu0 %v1432_v1  ;;  %1287 = vmatpush3.bf16.msra.mxu1 %v1364_v41 }
 0x2af   :  { %1288 = vmatprep.subr.bf16.mxu1 %v1432_v1 }
 0x2b1   :  { %1271 = vmatpush3.bf16.msra.mxu0 %v1358_v34 }
 0x2b2   :  { %1272 = vmatprep.subr.bf16.mxu0 %v1432_v1  ;;  %1289 = vmatpush3.bf16.msra.mxu1 %v1365_v42 }
 0x2b3   :  { %1290 = vmatprep.subr.bf16.mxu1 %v1432_v1 }
 0x2b5   :  { %1273 = vmatpush3.bf16.msra.mxu0 %v1359_v35 }
 0x2b6   :  { %1274 = vmatprep.subr.bf16.mxu0 %v1432_v1  ;;  %1291 = vmatpush3.bf16.msra.mxu1 %v1366_v43 }
 0x2b7   :  { %1292 = vmatprep.subr.bf16.mxu1 %v1432_v1 }
 0x2b9   :  { %1275 = vmatpush3.bf16.msra.mxu0 %v1360_v36 }
 0x2ba   :  { %1293 = vmatpush3.bf16.msra.mxu1 %v1367_v44 }
 0x2bb   :  { %1294 = vmatprep.subr.bf16.mxu1 %v1432_v1 }
 0x2bc   :  { %1277 = vmatmul.mubr.bf16.vlgmr.msra.gmra.mxu0 %v772_v37 }
 0x2be   :  { %1295 = vmatpush3.bf16.msra.mxu1 %v1368_v45 }
 0x35c   :  { %v658_v46 = vpop.f32.mrf.mxu0 }
 0x35d   :  { %v664_v56 = vadd.f32 %v658_v46, %v557_v55 }
 0x35e   :  { %v1238_v47 = vpop.f32.mrf.mxu0 }
 0x360   :  { %v661_v48 = vpop.f32.mrf.mxu0  ;;  %v765_v49 = vpop.f32.mrf.mxu1 }
 0x361   :  { %v771_v1 = vadd.f32 %v765_v49, %v664_v56 }
 0x362   :  { %v1239_v50 = vpop.f32.mrf.mxu0  ;;  %v1258_v51 = vpop.f32.mrf.mxu1 }
 0x364   :  { %v768_v52 = vpop.f32.mrf.mxu1 }
 0x366   :  { %v1259_v53 = vpop.f32.mrf.mxu1 }
 0x37c   :  { %v872_v57 = vpop.f32.mrf.mxu0 }
 0x37d   :  { %v878_v58 = vadd.f32 %v872_v57, %v771_v1 }
 0x37e   :  { %v1278_v59 = vpop.f32.mrf.mxu0 }
 0x37f   :  { %v879_v60 = vpack.c.bf16 %v878_v58, %v878_v58 }
 0x380   :  { %v875_v61 = vpop.f32.mrf.mxu0 }
 0x381   :  { %1297 = vmatmul.mubr.bf16.vlgmr.msra.gmra.mxu1 %v879_v60 }
 0x382   :  { %v1279_v62 = vpop.f32.mrf.mxu0 }
 0x441   :  { %v979_v2 = vpop.f32.mrf.mxu1 }
 0x442   :  { %v980_v3 = vadd.f32 %v979_v2, %v896_v63 }
 0x443   :  { %v1298_v4 = vpop.f32.mrf.mxu1 }
 0x444   :  { %985 = vst [vmem:[#allocation7] sm:$0xff] %v980_v3 }
 0x445   :  { %v982_v5 = vpop.f32.mrf.mxu1 }
 0x446   :  { %1413 = shalt.err (!%p1410_p0)
}
 0x447   :  { %995 = dma.vmem_to_hbm [thread:$0]  %s993_s16, 128, %s1626_s7, [#allocation4]   ;;  %v1299_v6 = vpop.f32.mrf.mxu1 }
 0x448   :  { %1426 = dma.done.wait [#allocation4], 128  }
 0x449   :  { %1427 = vsyncadd [#allocation4], 4294967168 }
 0x44a   :  { %999 = vsyncpa [#allocation3], 1 }
 0x44b   :  { %1000 = vsyncpa [#allocation4], 1 }
 0x44c   :  { %1001 = vsyncpa [#allocation5], 1 }

</bundles_post_ra>
